<compile_context>
chip_gen: v7x
topology: tpu7x:2x2x1
jax: 0.10.0
libtpu: 0.0.40
codegen_flags: <defaults>
</compile_context>

<pallas_src>
import functools

import jax
import jax.numpy as jnp
from jax.experimental import pallas as pl
from jax.experimental.pallas import tpu as pltpu

HIDDEN = 256
IN_FEATURES = 2
MAX_BATCH_BLOCK = 512  # rows per grid step; sized for v7x's 32 MiB scoped VMEM


def _round_up(n, m):
    return ((n + m - 1) // m) * m


def _encoder_kernel(x_ref, w1_ref, b1_ref, w2_ref, b2_ref, w3_ref, b3_ref,
                    wz_ref, bz_ref, out_ref, kl_ref, *, latent_dims):
    # ---- layer 1 (2 -> 256) on the VPU: two broadcast FMAs, no padding ----
    x = x_ref[...]                      # (TB, 2)  f32
    w1 = w1_ref[...]                    # (2, 256) f32
    h = x[:, 0:1] * w1[0:1, :] + x[:, 1:2] * w1[1:2, :] + b1_ref[...]
    h = jnp.maximum(h, 0.0)

    # ---- layers 2 & 3 on the MXU: bf16 weights upcast, f32 accumulation ----
    h = jnp.dot(h, w2_ref[...].astype(jnp.float32),
                preferred_element_type=jnp.float32)
    h = jnp.maximum(h + b2_ref[...], 0.0)
    h = jnp.dot(h, w3_ref[...].astype(jnp.float32),
                preferred_element_type=jnp.float32)
    h = jnp.maximum(h + b3_ref[...], 0.0)

    # ---- fused mu|sigma head: one (256, 2L) matmul ----
    z = jnp.dot(h, wz_ref[...].astype(jnp.float32),
                preferred_element_type=jnp.float32) + bz_ref[...]   # [mu | logsig]

    lane = jax.lax.broadcasted_iota(jnp.int32, z.shape, dimension=1)
    is_sig = lane >= latent_dims
    out = jnp.where(is_sig, jnp.exp(z), z)          # [mu | sigma]
    out_ref[...] = out.astype(out_ref.dtype)

    # Per-row KL partial, computed from logsig directly:
    #   mu lanes contribute mu^2/2 ; sigma lanes contribute sigma^2/2 - logsig.
    kl_ref[...] = jnp.sum(out * out * 0.5 - jnp.where(is_sig, z, 0.0),
                          axis=-1, keepdims=True).astype(kl_ref.dtype)


@functools.partial(jax.jit, static_argnames=("latent_dims",))
def encoder_forward(x, params, latent_dims):
    """Encoder forward. Returns (mu, sigma, kl) like the PyTorch module
    (kl is what PyTorch stores in self.kl)."""
    w1, b1, w2, b2, w3, b3, wz, bz = params

    B = x.shape[0]
    x_flat = x.reshape(B, -1).astype(jnp.float32)   # torch.flatten(x, start_dim=1)
    assert x_flat.shape[1] == IN_FEATURES

    # Batch tiling: block is a multiple of 8 sublanes, capped for VMEM.
    tb = min(MAX_BATCH_BLOCK, _round_up(B, 8))
    grid = pl.cdiv(B, tb)
    b_pad = grid * tb
    if b_pad != B:
        x_flat = jnp.pad(x_flat, ((0, b_pad - B), (0, 0)))

    two_l = 2 * latent_dims
    const = lambda i: (0, 0)
    kernel = functools.partial(_encoder_kernel, latent_dims=latent_dims)

    out, kl_rows = pl.pallas_call(
        kernel,
        grid=(grid,),
        in_specs=[
            pl.BlockSpec((tb, IN_FEATURES), lambda i: (i, 0)),   # x block streams
            pl.BlockSpec((IN_FEATURES, HIDDEN), const),          # w1 (resident)
            pl.BlockSpec((1, HIDDEN), const),                    # b1
            pl.BlockSpec((HIDDEN, HIDDEN), const),               # w2 (bf16, resident)
            pl.BlockSpec((1, HIDDEN), const),                    # b2
            pl.BlockSpec((HIDDEN, HIDDEN), const),               # w3 (bf16, resident)
            pl.BlockSpec((1, HIDDEN), const),                    # b3
            pl.BlockSpec((HIDDEN, two_l), const),                # wmu|wsig fused (bf16)
            pl.BlockSpec((1, two_l), const),                     # bmu|bsig fused
        ],
        out_specs=(
            pl.BlockSpec((tb, two_l), lambda i: (i, 0)),         # [mu | sigma]
            pl.BlockSpec((tb, 1), lambda i: (i, 0)),             # per-row KL partial
        ),
        out_shape=(
            jax.ShapeDtypeStruct((b_pad, two_l), jnp.float32),
            jax.ShapeDtypeStruct((b_pad, 1), jnp.float32),
        ),
        compiler_params=pltpu.CompilerParams(
            dimension_semantics=("parallel",)),
    )(x_flat, w1, b1, w2, b2, w3, b3, wz, bz)

    mu = out[:B, :latent_dims]
    sigma = out[:B, latent_dims:]
    kl = jnp.sum(kl_rows[:B, 0])
    return mu, sigma, kl


def init_params(key, latent_dims):
    """nn.Linear-style init: U(-1/sqrt(fan_in), +1/sqrt(fan_in)).
    Weights stored as (in_features, out_features) so y = x @ W + b."""
    def linear(k, fan_in, fan_out):
        kw, kb = jax.random.split(k)
        bound = 1.0 / jnp.sqrt(fan_in)
        w = jax.random.uniform(kw, (fan_in, fan_out), jnp.float32, -bound, bound)
        b = jax.random.uniform(kb, (fan_out,), jnp.float32, -bound, bound)
        return w, b

    k1, k2, k3, k4, k5 = jax.random.split(key, 5)
    w1, b1 = linear(k1, IN_FEATURES, HIDDEN)
    w2, b2 = linear(k2, HIDDEN, HIDDEN)
    w3, b3 = linear(k3, HIDDEN, HIDDEN)
    wmu, bmu = linear(k4, HIDDEN, latent_dims)
    wsig, bsig = linear(k5, HIDDEN, latent_dims)
    return (w1, b1, w2, b2, w3, b3, wmu, bmu, wsig, bsig)


def prepare_params(raw):
    """One-time packing for the kernel: bf16 big weights, fused heads,
    (1, N)-shaped biases.  Done once at init, not per call."""
    w1, b1, w2, b2, w3, b3, wmu, bmu, wsig, bsig = raw
    wz = jnp.concatenate([wmu, wsig], axis=1).astype(jnp.bfloat16)
    bz = jnp.concatenate([bmu, bsig]).reshape(1, -1).astype(jnp.float32)
    return (
        w1.astype(jnp.float32), b1.reshape(1, HIDDEN).astype(jnp.float32),
        w2.astype(jnp.bfloat16), b2.reshape(1, HIDDEN).astype(jnp.float32),
        w3.astype(jnp.bfloat16), b3.reshape(1, HIDDEN).astype(jnp.float32),
        wz, bz,
    )


def encoder_reference(x, prepared, latent_dims):
    """Pure-JAX reference matching the PyTorch forward, using the same
    (bf16-stored) weights the kernel consumes."""
    w1, b1, w2, b2, w3, b3, wz, bz = prepared
    h = x.reshape(x.shape[0], -1).astype(jnp.float32)
    h = jax.nn.relu(h @ w1 + b1)
    h = jax.nn.relu(h @ w2.astype(jnp.float32) + b2)
    h = jax.nn.relu(h @ w3.astype(jnp.float32) + b3)
    z = h @ wz.astype(jnp.float32) + bz
    mu = z[:, :latent_dims]
    logsig = z[:, latent_dims:]
    sigma = jnp.exp(logsig)
    kl = jnp.sum((sigma ** 2 + mu ** 2) / 2 - logsig)
    return mu, sigma, kl


if __name__ == "__main__":
    LATENT_DIMS = 4
    BATCH = 8  # toy demo batch; for real throughput batch many calls together

    key = jax.random.PRNGKey(0)
    k_params, k_x = jax.random.split(key)
    params = prepare_params(init_params(k_params, LATENT_DIMS))
    # Input: (batch, 2) positions — what the FireEvac encoder consumes.
    x = jax.random.normal(k_x, (BATCH, IN_FEATURES), jnp.float32)

    mu, sigma, kl = encoder_forward(x, params, LATENT_DIMS)
    jax.block_until_ready((mu, sigma, kl))

    mu_ref, sigma_ref, kl_ref = encoder_reference(x, params, LATENT_DIMS)
    assert mu.shape == (BATCH, LATENT_DIMS) and sigma.shape == (BATCH, LATENT_DIMS)
    assert jnp.allclose(mu, mu_ref, atol=2e-2, rtol=2e-2)
    assert jnp.allclose(sigma, sigma_ref, atol=2e-2, rtol=2e-2)
    assert jnp.allclose(kl, kl_ref, atol=5e-2, rtol=2e-2)

    print("KERNEL_OK")
</pallas_src>

<mosaic_0001>
module attributes {stable_mosaic.version = 11 : i64} {
  func.func @_encoder_kernel(%arg0: i32, %arg1: memref<8x2xf32, #tpu.memory_space<vmem>>, %arg2: memref<2x256xf32, #tpu.memory_space<vmem>>, %arg3: memref<1x256xf32, #tpu.memory_space<vmem>>, %arg4: memref<256x256xbf16, #tpu.memory_space<vmem>>, %arg5: memref<1x256xf32, #tpu.memory_space<vmem>>, %arg6: memref<256x256xbf16, #tpu.memory_space<vmem>>, %arg7: memref<1x256xf32, #tpu.memory_space<vmem>>, %arg8: memref<256x8xbf16, #tpu.memory_space<vmem>>, %arg9: memref<1x8xf32, #tpu.memory_space<vmem>>, %arg10: memref<8x8xf32, #tpu.memory_space<vmem>>, %arg11: memref<8x1xf32, #tpu.memory_space<vmem>>) attributes {dimension_semantics = [#tpu.dimension_semantics<parallel>], iteration_bounds = array<i64: 1>, scalar_prefetch = 0 : i64, scratch_operands = 0 : i64, tpu.core_type = #tpu.core_type<tc>, window_params = [{transform_indices = @transform_0, window_bounds = array<i64: 8, 2>}, {pipeline_mode = #tpu.pipeline_mode<synchronous>, transform_indices = @transform_1, window_bounds = array<i64: 2, 256>}, {pipeline_mode = #tpu.pipeline_mode<synchronous>, transform_indices = @transform_2, window_bounds = array<i64: 1, 256>}, {pipeline_mode = #tpu.pipeline_mode<synchronous>, transform_indices = @transform_3, window_bounds = array<i64: 256, 256>}, {pipeline_mode = #tpu.pipeline_mode<synchronous>, transform_indices = @transform_4, window_bounds = array<i64: 1, 256>}, {pipeline_mode = #tpu.pipeline_mode<synchronous>, transform_indices = @transform_5, window_bounds = array<i64: 256, 256>}, {pipeline_mode = #tpu.pipeline_mode<synchronous>, transform_indices = @transform_6, window_bounds = array<i64: 1, 256>}, {pipeline_mode = #tpu.pipeline_mode<synchronous>, transform_indices = @transform_7, window_bounds = array<i64: 256, 8>}, {pipeline_mode = #tpu.pipeline_mode<synchronous>, transform_indices = @transform_8, window_bounds = array<i64: 1, 8>}, {transform_indices = @transform_9, window_bounds = array<i64: 8, 8>}, {transform_indices = @transform_10, window_bounds = array<i64: 8, 1>}]} {
    %c0 = arith.constant 0 : index
    %c0_0 = arith.constant 0 : index
    %0 = vector.load %arg1[%c0, %c0_0] : memref<8x2xf32, #tpu.memory_space<vmem>>, vector<8x2xf32>
    %c0_1 = arith.constant 0 : index
    %c0_2 = arith.constant 0 : index
    %1 = vector.load %arg2[%c0_1, %c0_2] : memref<2x256xf32, #tpu.memory_space<vmem>>, vector<2x256xf32>
    %2 = vector.extract_strided_slice %0 {offsets = [0, 0], sizes = [8, 1], strides = [1, 1]} : vector<8x2xf32> to vector<8x1xf32>
    %3 = vector.extract_strided_slice %1 {offsets = [0, 0], sizes = [1, 256], strides = [1, 1]} : vector<2x256xf32> to vector<1x256xf32>
    %4 = vector.broadcast %2 : vector<8x1xf32> to vector<8x256xf32>
    %5 = vector.broadcast %3 : vector<1x256xf32> to vector<8x256xf32>
    %6 = arith.mulf %4, %5 : vector<8x256xf32>
    %7 = vector.extract_strided_slice %0 {offsets = [0, 1], sizes = [8, 1], strides = [1, 1]} : vector<8x2xf32> to vector<8x1xf32>
    %8 = vector.extract_strided_slice %1 {offsets = [1, 0], sizes = [1, 256], strides = [1, 1]} : vector<2x256xf32> to vector<1x256xf32>
    %9 = vector.broadcast %7 : vector<8x1xf32> to vector<8x256xf32>
    %10 = vector.broadcast %8 : vector<1x256xf32> to vector<8x256xf32>
    %11 = arith.mulf %9, %10 : vector<8x256xf32>
    %12 = arith.addf %6, %11 : vector<8x256xf32>
    %c0_3 = arith.constant 0 : index
    %c0_4 = arith.constant 0 : index
    %13 = vector.load %arg3[%c0_3, %c0_4] : memref<1x256xf32, #tpu.memory_space<vmem>>, vector<1x256xf32>
    %14 = vector.broadcast %13 : vector<1x256xf32> to vector<8x256xf32>
    %15 = arith.addf %12, %14 : vector<8x256xf32>
    %cst = arith.constant 0.000000e+00 : f32
    %16 = vector.broadcast %cst : f32 to vector<8x256xf32>
    %17 = arith.maximumf %15, %16 : vector<8x256xf32>
    %c0_5 = arith.constant 0 : index
    %c0_6 = arith.constant 0 : index
    %18 = vector.load %arg4[%c0_5, %c0_6] : memref<256x256xbf16, #tpu.memory_space<vmem>>, vector<256x256xbf16>
    %19 = arith.extf %18 : vector<256x256xbf16> to vector<256x256xf32>
    %cst_7 = arith.constant dense<0.000000e+00> : vector<8x256xf32>
    %20 = tpu.matmul %17, %19, %cst_7 {dimension_numbers = #tpu.dot_dimension_numbers<[1], [0], [0], [1], [0, 0, 1, 1], [], []>} : vector<8x256xf32>, vector<256x256xf32>, vector<8x256xf32> -> vector<8x256xf32>
    %c0_8 = arith.constant 0 : index
    %c0_9 = arith.constant 0 : index
    %21 = vector.load %arg5[%c0_8, %c0_9] : memref<1x256xf32, #tpu.memory_space<vmem>>, vector<1x256xf32>
    %22 = vector.broadcast %21 : vector<1x256xf32> to vector<8x256xf32>
    %23 = arith.addf %20, %22 : vector<8x256xf32>
    %cst_10 = arith.constant 0.000000e+00 : f32
    %24 = vector.broadcast %cst_10 : f32 to vector<8x256xf32>
    %25 = arith.maximumf %23, %24 : vector<8x256xf32>
    %c0_11 = arith.constant 0 : index
    %c0_12 = arith.constant 0 : index
    %26 = vector.load %arg6[%c0_11, %c0_12] : memref<256x256xbf16, #tpu.memory_space<vmem>>, vector<256x256xbf16>
    %27 = arith.extf %26 : vector<256x256xbf16> to vector<256x256xf32>
    %cst_13 = arith.constant dense<0.000000e+00> : vector<8x256xf32>
    %28 = tpu.matmul %25, %27, %cst_13 {dimension_numbers = #tpu.dot_dimension_numbers<[1], [0], [0], [1], [0, 0, 1, 1], [], []>} : vector<8x256xf32>, vector<256x256xf32>, vector<8x256xf32> -> vector<8x256xf32>
    %c0_14 = arith.constant 0 : index
    %c0_15 = arith.constant 0 : index
    %29 = vector.load %arg7[%c0_14, %c0_15] : memref<1x256xf32, #tpu.memory_space<vmem>>, vector<1x256xf32>
    %30 = vector.broadcast %29 : vector<1x256xf32> to vector<8x256xf32>
    %31 = arith.addf %28, %30 : vector<8x256xf32>
    %cst_16 = arith.constant 0.000000e+00 : f32
    %32 = vector.broadcast %cst_16 : f32 to vector<8x256xf32>
    %33 = arith.maximumf %31, %32 : vector<8x256xf32>
    %c0_17 = arith.constant 0 : index
    %c0_18 = arith.constant 0 : index
    %34 = vector.load %arg8[%c0_17, %c0_18] : memref<256x8xbf16, #tpu.memory_space<vmem>>, vector<256x8xbf16>
    %35 = arith.extf %34 : vector<256x8xbf16> to vector<256x8xf32>
    %cst_19 = arith.constant dense<0.000000e+00> : vector<8x8xf32>
    %36 = tpu.matmul %33, %35, %cst_19 {dimension_numbers = #tpu.dot_dimension_numbers<[1], [0], [0], [1], [0, 0, 1, 1], [], []>} : vector<8x256xf32>, vector<256x8xf32>, vector<8x8xf32> -> vector<8x8xf32>
    %c0_20 = arith.constant 0 : index
    %c0_21 = arith.constant 0 : index
    %37 = vector.load %arg9[%c0_20, %c0_21] : memref<1x8xf32, #tpu.memory_space<vmem>>, vector<1x8xf32>
    %38 = vector.broadcast %37 : vector<1x8xf32> to vector<8x8xf32>
    %39 = arith.addf %36, %38 : vector<8x8xf32>
    %40 = tpu.iota {dimensions = array<i32: 1>} : vector<8x8xi32>
    %c4_i32 = arith.constant 4 : i32
    %41 = vector.broadcast %c4_i32 : i32 to vector<8x8xi32>
    %42 = arith.cmpi sge, %40, %41 : vector<8x8xi32>
    %43 = math.exp %39 : vector<8x8xf32>
    %44 = arith.select %42, %43, %39 : vector<8x8xi1>, vector<8x8xf32>
    %c0_22 = arith.constant 0 : index
    %c0_23 = arith.constant 0 : index
    %45 = vector.load %arg10[%c0_22, %c0_23] : memref<8x8xf32, #tpu.memory_space<vmem>>, vector<8x8xf32>
    tpu.vector_store %arg10[%c0_22, %c0_23], %44 {strides = array<i32>} : memref<8x8xf32, #tpu.memory_space<vmem>>, vector<8x8xf32>,
    %46 = arith.mulf %44, %44 : vector<8x8xf32>
    %cst_24 = arith.constant 5.000000e-01 : f32
    %47 = vector.broadcast %cst_24 : f32 to vector<8x8xf32>
    %48 = arith.mulf %46, %47 : vector<8x8xf32>
    %cst_25 = arith.constant 0.000000e+00 : f32
    %49 = vector.broadcast %cst_25 : f32 to vector<8x8xf32>
    %50 = arith.select %42, %39, %49 : vector<8x8xi1>, vector<8x8xf32>
    %51 = arith.subf %48, %50 : vector<8x8xf32>
    %cst_26 = arith.constant dense<0.000000e+00> : vector<8xf32>
    %52 = vector.multi_reduction <add>, %51, %cst_26 [1] : vector<8x8xf32> to vector<8xf32>
    %53 = vector.shape_cast %52 : vector<8xf32> to vector<8x1xf32>
    %c0_27 = arith.constant 0 : index
    %c0_28 = arith.constant 0 : index
    %54 = vector.load %arg11[%c0_27, %c0_28] : memref<8x1xf32, #tpu.memory_space<vmem>>, vector<8x1xf32>
    tpu.vector_store %arg11[%c0_27, %c0_28], %53 {strides = array<i32>} : memref<8x1xf32, #tpu.memory_space<vmem>>, vector<8x1xf32>,
    return
  }
  func.func @transform_0(%arg0: i32) -> (i32, i32) {
    %c0_i32 = arith.constant 0 : i32
    %c0_i32_0 = arith.constant 0 : i32
    return %arg0, %c0_i32 : i32, i32
  }
  func.func @transform_1(%arg0: i32) -> (i32, i32) {
    %c0_i32 = arith.constant 0 : i32
    %c0_i32_0 = arith.constant 0 : i32
    %c0_i32_1 = arith.constant 0 : i32
    return %c0_i32, %c0_i32_0 : i32, i32
  }
  func.func @transform_2(%arg0: i32) -> (i32, i32) {
    %c0_i32 = arith.constant 0 : i32
    %c0_i32_0 = arith.constant 0 : i32
    %c0_i32_1 = arith.constant 0 : i32
    return %c0_i32, %c0_i32_0 : i32, i32
  }
  func.func @transform_3(%arg0: i32) -> (i32, i32) {
    %c0_i32 = arith.constant 0 : i32
    %c0_i32_0 = arith.constant 0 : i32
    %c0_i32_1 = arith.constant 0 : i32
    return %c0_i32, %c0_i32_0 : i32, i32
  }
  func.func @transform_4(%arg0: i32) -> (i32, i32) {
    %c0_i32 = arith.constant 0 : i32
    %c0_i32_0 = arith.constant 0 : i32
    %c0_i32_1 = arith.constant 0 : i32
    return %c0_i32, %c0_i32_0 : i32, i32
  }
  func.func @transform_5(%arg0: i32) -> (i32, i32) {
    %c0_i32 = arith.constant 0 : i32
    %c0_i32_0 = arith.constant 0 : i32
    %c0_i32_1 = arith.constant 0 : i32
    return %c0_i32, %c0_i32_0 : i32, i32
  }
  func.func @transform_6(%arg0: i32) -> (i32, i32) {
    %c0_i32 = arith.constant 0 : i32
    %c0_i32_0 = arith.constant 0 : i32
    %c0_i32_1 = arith.constant 0 : i32
    return %c0_i32, %c0_i32_0 : i32, i32
  }
  func.func @transform_7(%arg0: i32) -> (i32, i32) {
    %c0_i32 = arith.constant 0 : i32
    %c0_i32_0 = arith.constant 0 : i32
    %c0_i32_1 = arith.constant 0 : i32
    return %c0_i32, %c0_i32_0 : i32, i32
  }
  func.func @transform_8(%arg0: i32) -> (i32, i32) {
    %c0_i32 = arith.constant 0 : i32
    %c0_i32_0 = arith.constant 0 : i32
    %c0_i32_1 = arith.constant 0 : i32
    return %c0_i32, %c0_i32_0 : i32, i32
  }
  func.func @transform_9(%arg0: i32) -> (i32, i32) {
    %c0_i32 = arith.constant 0 : i32
    %c0_i32_0 = arith.constant 0 : i32
    return %arg0, %c0_i32 : i32, i32
  }
  func.func @transform_10(%arg0: i32) -> (i32, i32) {
    %c0_i32 = arith.constant 0 : i32
    %c0_i32_0 = arith.constant 0 : i32
    return %arg0, %c0_i32 : i32, i32
  }
}

</mosaic_0001>

<bundles_post_ra>
// kernel: encoder_forward.1
= control target key start
LH: loop header
LB: loop body
LE: loop exit
PB: predicated region body
PF: predicated region fallthrough
CT: control target
= control target key end

     0   :  { %16 = vsyncpa [#allocation3], 0  ;;  %s1330_s0 = inlined_call_operand.vmem [shape: f32[8,2], index: 0, kind: input, shape index: {}]   ;;  %s1331_s1 = inlined_call_operand.vmem [shape: f32[2,256], index: 1, kind: input, shape index: {}]   ;;  %s1332_s2 = inlined_call_operand.vmem [shape: f32[1,256], index: 2, kind: input, shape index: {}]   ;;  %s1333_s3 = inlined_call_operand.hbm [shape: bf16[256,256], index: 3, kind: input, shape index: {}]   ;;  %s1334_s4 = inlined_call_operand.vmem [shape: f32[1,256], index: 4, kind: input, shape index: {}]   ;;  %s1335_s5 = inlined_call_operand.hbm [shape: bf16[256,256], index: 5, kind: input, shape index: {}]   ;;  %s1336_s6 = inlined_call_operand.vmem [shape: f32[1,256], index: 6, kind: input, shape index: {}]   ;;  %s1337_s7 = inlined_call_operand.vmem [shape: bf16[256,8], index: 7, kind: input, shape index: {}]   ;;  %s1338_s8 = inlined_call_operand.vmem [shape: f32[1,8], index: 8, kind: input, shape index: {}]   ;;  %s1339_s9 = inlined_call_operand.vmem [shape: f32[8,8], index: 9, kind: output, shape index: {0}]   ;;  %s1340_s10 = inlined_call_operand.vmem [shape: f32[8,1], index: 10, kind: output, shape index: {1}]  }
   0x1   :  { %17 = vsyncpa [#allocation5], 0  ;;  %s1155_s13 = smov [#allocation2]   ;;  %s1107_s17 = scalar_lea.hbm %s1333_s3, 4096 }
   0x2   :  { %s29_s14 = sshll.u32 %s1155_s13, 4  ;;  %p1108_p0 = scmp.ne.s32.totalorder %s1333_s3, %s1107_s17  ;;  %s30_s14 = int_to_ptr.vmem [resolvable:$true] %s29_s14 }
   0x3   :  { %p1111_p1 = scmp.lt.u32.totalorder %s1107_s17, %s1333_s3 }
   0x5   :  { %p1113_p2 = pnand %p1111_p1, %p1108_p0 }
   0x7   :  { %1116 = shalt.err (!%p1113_p2)
}
   0x8   :  { %s1117_s22 = scalar_lea.vmem %s30_s14, 4096  ;;  %p1122_p4 = scmp.lt.s32.totalorder %s30_s14, %s30_s14 }
   0x9   :  { %p1118_p3 = scmp.ne.s32.totalorder %s30_s14, %s1117_s22  ;;  %p1123_p5 = scmp.lt.s32.totalorder %s1117_s22, %s1117_s22 }
   0xb   :  { %p1124_p6 = por %p1123_p5, %p1122_p4 }
   0xd   :  { %p1125_p7 = pnand %p1124_p6, %p1118_p3 }
   0xf   :  { %1128 = shalt.err (!%p1125_p7)
}
  0x10   :  { %s1156_s23 = smov 128   ;;  %s1157_s24 = smov 8  }
  0x11   :  { %35 = dma.hbm_to_vmem [thread:$0]  %s1333_s3, 4096, %s30_s14, [#allocation3], %s1156_s23, %s1156_s23, %s1157_s24  }
  0x12   :  { %s1158_s27 = smov [#allocation4]   ;;  %s1129_s11 = scalar_lea.hbm %s1335_s5, 4096 }
  0x13   :  { %s43_s28 = sshll.u32 %s1158_s27, 4  ;;  %p1130_p8 = scmp.ne.s32.totalorder %s1335_s5, %s1129_s11  ;;  %s44_s28 = int_to_ptr.vmem [resolvable:$true] %s43_s28 }
  0x14   :  { %p1133_p9 = scmp.lt.u32.totalorder %s1129_s11, %s1335_s5 }
  0x16   :  { %p1135_p10 = pnand %p1133_p9, %p1130_p8 }
  0x18   :  { %1138 = shalt.err (!%p1135_p10)
}
  0x19   :  { %s1139_s17 = scalar_lea.vmem %s44_s28, 4096  ;;  %p1144_p12 = scmp.lt.s32.totalorder %s44_s28, %s44_s28 }
  0x1a   :  { %p1140_p11 = scmp.ne.s32.totalorder %s44_s28, %s1139_s17  ;;  %p1145_p13 = scmp.lt.s32.totalorder %s1139_s17, %s1139_s17 }
  0x1c   :  { %p1146_p0 = por %p1145_p13, %p1144_p12 }
  0x1e   :  { %p1147_p1 = pnand %p1146_p0, %p1140_p11 }
  0x20   :  { %1150 = shalt.err (!%p1147_p1)
}
  0x21   :  { %49 = dma.hbm_to_vmem [thread:$0]  %s1335_s5, 4096, %s44_s28, [#allocation5], %s1156_s23, %s1156_s23, %s1157_s24  }
  0x22   :  { %1151 = dma.done.wait [#allocation3], 4096  }
  0x23   :  { %1152 = vsyncadd [#allocation3], 4294963200 }
  0x24   :  { %1153 = dma.done.wait [#allocation5], 4096  }
  0x25   :  { %1154 = vsyncadd [#allocation5], 4294963200  ;;  %v1159_v0 = vmov 0   ;;  %v62_v1 = vld [vmem:[%s1330_s0] sm:$0xff]  ;;  %v1012_v4 = vld [vmem:[#allocation2 + $0x14] ss:$8 sps:$4 sm:$0xff]  }
  0x26   :  { %1007 = vset.pattern.permute.xlu0 %v1159_v0  ;;  %v1009_v2 = vld [vmem:[#allocation2 + $0x4] ss:$8 sps:$4 sm:$0xff]   ;;  %v1011_v3 = vld [vmem:[#allocation2] ss:$8 sps:$4 sm:$0xff]   ;;  %v1014_v5 = vld [vmem:[#allocation2 + $0x10] ss:$8 sps:$4 sm:$0xff]   ;;  %v70_v0 = vlaneseq }
  0x27   :  { %66 = vperm.xlu0 %1007, %v62_v1   ;;  %778 = vmatprep.subr.bf16.mxu0 %v1009_v2  ;;  %v1160_v6 = vmov 1   ;;  %v1015_v7 = vld [vmem:[#allocation2 + $0x24] ss:$8 sps:$4 sm:$0xff]   ;;  %v1017_v8 = vld [vmem:[#allocation2 + $0x20] ss:$8 sps:$4 sm:$0xff]   ;;  %vm641_vm0 = vcmask 64512  }
  0x28   :  { %780 = vmatpush1.bf16.msra.mxu0 %v1011_v3  ;;  %v1018_v9 = vld [vmem:[#allocation2 + $0x34] ss:$8 sps:$4 sm:$0xff]   ;;  %v1020_v10 = vld [vmem:[#allocation2 + $0x30] ss:$8 sps:$4 sm:$0xff]   ;;  %v1021_v11 = vld [vmem:[#allocation2 + $0x44] ss:$8 sps:$4 sm:$0xff]  }
  0x29   :  { %782 = vmatprep.subr.bf16.mxu0 %v1012_v4  ;;  %v1023_v12 = vld [vmem:[#allocation2 + $0x40] ss:$8 sps:$4 sm:$0xff]   ;;  %v1024_v13 = vld [vmem:[#allocation2 + $0x54] ss:$8 sps:$4 sm:$0xff]   ;;  %v1026_v14 = vld [vmem:[#allocation2 + $0x50] ss:$8 sps:$4 sm:$0xff]  }
  0x2a   :  { %v1027_v15 = vld [vmem:[#allocation2 + $0x64] ss:$8 sps:$4 sm:$0xff]   ;;  %v1059_v17 = vld [vmem:[#allocation4] ss:$8 sps:$4 sm:$0xff]   ;;  %v1060_v19 = vld [vmem:[#allocation4 + $0x14] ss:$8 sps:$4 sm:$0xff]  }
  0x2b   :  { %1008 = vset.pattern.permute.xlu0 %v1160_v6  ;;  %v1057_v16 = vld [vmem:[#allocation4 + $0x4] ss:$8 sps:$4 sm:$0xff]   ;;  %v1029_v18 = vld [vmem:[#allocation2 + $0x60] ss:$8 sps:$4 sm:$0xff]   ;;  %v1030_v20 = vld [vmem:[#allocation2 + $0x74] ss:$8 sps:$4 sm:$0xff]  }
  0x2c   :  { %91 = vperm.xlu0 %1008, %v62_v1   ;;  %784 = vmatpush1.bf16.msra.mxu0 %v1014_v5  ;;  %v1062_v21 = vld [vmem:[#allocation4 + $0x10] ss:$8 sps:$4 sm:$0xff]   ;;  %v1063_v22 = vld [vmem:[#allocation4 + $0x24] ss:$8 sps:$4 sm:$0xff]   ;;  %v1065_v25 = vld [vmem:[#allocation4 + $0x20] ss:$8 sps:$4 sm:$0xff]  }
  0x2d   :  { %786 = vmatprep.subr.bf16.mxu0 %v1015_v7  ;;  %842 = vmatprep.subr.bf16.mxu1 %v1057_v16  ;;  %v1032_v23 = vld [vmem:[#allocation2 + $0x70] ss:$8 sps:$4 sm:$0xff]   ;;  %v1033_v24 = vld [vmem:[#allocation2 + $0x84] ss:$8 sps:$4 sm:$0xff]   ;;  %v1066_v26 = vld [vmem:[#allocation4 + $0x34] ss:$8 sps:$4 sm:$0xff]  }
  0x2e   :  { %844 = vmatpush1.bf16.msra.mxu1 %v1059_v17  ;;  %v1035_v27 = vld [vmem:[#allocation2 + $0x80] ss:$8 sps:$4 sm:$0xff]   ;;  %v1036_v28 = vld [vmem:[#allocation2 + $0x94] ss:$8 sps:$4 sm:$0xff]   ;;  %v1068_v29 = vld [vmem:[#allocation4 + $0x30] ss:$8 sps:$4 sm:$0xff]  }
  0x2f   :  { %846 = vmatprep.subr.bf16.mxu1 %v1060_v19  ;;  %v1069_v30 = vld [vmem:[#allocation4 + $0x44] ss:$8 sps:$4 sm:$0xff]   ;;  %v1038_v31 = vld [vmem:[#allocation2 + $0x90] ss:$8 sps:$4 sm:$0xff]   ;;  %v1071_v33 = vld [vmem:[#allocation4 + $0x40] ss:$8 sps:$4 sm:$0xff]  }
  0x30   :  { %788 = vmatpush1.bf16.msra.mxu0 %v1017_v8  ;;  %v1039_v32 = vld [vmem:[#allocation2 + $0xa4] ss:$8 sps:$4 sm:$0xff]   ;;  %v1072_v34 = vld [vmem:[#allocation4 + $0x54] ss:$8 sps:$4 sm:$0xff]   ;;  %v1041_v35 = vld [vmem:[#allocation2 + $0xa0] ss:$8 sps:$4 sm:$0xff]  }
  0x31   :  { %790 = vmatprep.subr.bf16.mxu0 %v1018_v9  ;;  %v1042_v36 = vld [vmem:[#allocation2 + $0xb4] ss:$8 sps:$4 sm:$0xff]   ;;  %v1074_v37 = vld [vmem:[#allocation4 + $0x50] ss:$8 sps:$4 sm:$0xff]   ;;  %v1075_v38 = vld [vmem:[#allocation4 + $0x64] ss:$8 sps:$4 sm:$0xff]  }
  0x32   :  { %848 = vmatpush1.bf16.msra.mxu1 %v1062_v21  ;;  %v1044_v39 = vld [vmem:[#allocation2 + $0xb0] ss:$8 sps:$4 sm:$0xff]   ;;  %v1045_v40 = vld [vmem:[#allocation2 + $0xc4] ss:$8 sps:$4 sm:$0xff]   ;;  %v1077_v41 = vld [vmem:[#allocation4 + $0x60] ss:$8 sps:$4 sm:$0xff]  }
  0x33   :  { %850 = vmatprep.subr.bf16.mxu1 %v1063_v22  ;;  %v1078_v42 = vld [vmem:[#allocation4 + $0x74] ss:$8 sps:$4 sm:$0xff]   ;;  %v1047_v43 = vld [vmem:[#allocation2 + $0xc0] ss:$8 sps:$4 sm:$0xff]   ;;  %v1080_v45 = vld [vmem:[#allocation4 + $0x70] ss:$8 sps:$4 sm:$0xff]  }
  0x34   :  { %792 = vmatpush1.bf16.msra.mxu0 %v1020_v10  ;;  %v1048_v44 = vld [vmem:[#allocation2 + $0xd4] ss:$8 sps:$4 sm:$0xff]   ;;  %v1081_v46 = vld [vmem:[#allocation4 + $0x84] ss:$8 sps:$4 sm:$0xff]   ;;  %v1050_v47 = vld [vmem:[#allocation2 + $0xd0] ss:$8 sps:$4 sm:$0xff]  }
  0x35   :  { %794 = vmatprep.subr.bf16.mxu0 %v1021_v11  ;;  %v1051_v48 = vld [vmem:[#allocation2 + $0xe4] ss:$8 sps:$4 sm:$0xff]   ;;  %v1083_v49 = vld [vmem:[#allocation4 + $0x80] ss:$8 sps:$4 sm:$0xff]   ;;  %v1084_v50 = vld [vmem:[#allocation4 + $0x94] ss:$8 sps:$4 sm:$0xff]  }
  0x36   :  { %852 = vmatpush1.bf16.msra.mxu1 %v1065_v25  ;;  %v1053_v51 = vld [vmem:[#allocation2 + $0xe0] ss:$8 sps:$4 sm:$0xff]   ;;  %v1054_v52 = vld [vmem:[#allocation2 + $0xf4] ss:$8 sps:$4 sm:$0xff]   ;;  %v1086_v53 = vld [vmem:[#allocation4 + $0x90] ss:$8 sps:$4 sm:$0xff]  }
  0x37   :  { %854 = vmatprep.subr.bf16.mxu1 %v1066_v26  ;;  %v1087_v54 = vld [vmem:[#allocation4 + $0xa4] ss:$8 sps:$4 sm:$0xff]   ;;  %v1056_v55 = vld [vmem:[#allocation2 + $0xf0] ss:$8 sps:$4 sm:$0xff]   ;;  %v1089_v56 = vld [vmem:[#allocation4 + $0xa0] ss:$8 sps:$4 sm:$0xff]  }
  0x38   :  { %796 = vmatpush1.bf16.msra.mxu0 %v1023_v12  ;;  %v1090_v57 = vld [vmem:[#allocation4 + $0xb4] ss:$8 sps:$4 sm:$0xff]   ;;  %v1092_v58 = vld [vmem:[#allocation4 + $0xb0] ss:$8 sps:$4 sm:$0xff]   ;;  %v1093_v59 = vld [vmem:[#allocation4 + $0xc4] ss:$8 sps:$4 sm:$0xff]  }
  0x39   :  { %798 = vmatprep.subr.bf16.mxu0 %v1024_v13  ;;  %v1095_v60 = vld [vmem:[#allocation4 + $0xc0] ss:$8 sps:$4 sm:$0xff]   ;;  %v1096_v61 = vld [vmem:[#allocation4 + $0xd4] ss:$8 sps:$4 sm:$0xff]   ;;  %v1098_v62 = vld [vmem:[#allocation4 + $0xd0] ss:$8 sps:$4 sm:$0xff]  }
  0x3a   :  { %856 = vmatpush1.bf16.msra.mxu1 %v1068_v29  ;;  %v1099_v63 = vld [vmem:[#allocation4 + $0xe4] ss:$8 sps:$4 sm:$0xff]   ;;  %v71_v1 = vshrl.u32 %v70_v0, 7  ;;  %v63_v6 = vld [vmem:[%s1331_s1] sm:$0xf]  ;;  %vm650_vm2 = vcmask 7168  }
  0x3b   :  { %858 = vmatprep.subr.bf16.mxu1 %v1069_v30  ;;  %v116_v16 = vld [vmem:[%s1332_s2] sm:$0x3] }
  0x3c   :  { %800 = vmatpush1.bf16.msra.mxu0 %v1026_v14  ;;  %v1244_v2 = vsub.s32 0, %v71_v1  ;;  %v76_v3 = vsub.s32 2, %v71_v1  ;;  %v1246_v4 = vsub.s32 1, %v71_v1  ;;  %v100_v5 = vsub.s32 3, %v71_v1  ;;  %v1101_v30 = vld [vmem:[#allocation4 + $0xe0] ss:$8 sps:$4 sm:$0xff]  }
  0x3d   :  { %802 = vmatprep.subr.bf16.mxu0 %v1027_v15 }
  0x3e   :  { %860 = vmatpush1.bf16.msra.mxu1 %v1071_v33  ;;  %v73_v7 = vrot.slane %v63_v6, %v1244_v2  ;;  %v77_v8 = vrot.slane %v63_v6, %v76_v3  ;;  %v97_v9 = vrot.slane %v63_v6, %v1246_v4  ;;  %v101_v10 = vrot.slane %v63_v6, %v100_v5  ;;  %v734_v33 = vld [vmem:[%s1337_s7 + $0x40] sm:$0xff]  }
  0x3f   :  { %862 = vmatprep.subr.bf16.mxu1 %v1072_v34  ;;  %v125_v19 = vrot.slane %v116_v16, %v1246_v4  ;;  %v664_v34 = vld [vmem:[%s1337_s7] sm:$0xff]  }
  0x40   :  { %804 = vmatpush1.bf16.msra.mxu0 %v1029_v18  ;;  %v83_v12 = vrot.slane %v73_v7, %v1244_v2  ;;  %v87_v13 = vrot.slane %v77_v8, %v1244_v2  ;;  %v107_v14 = vrot.slane %v97_v9, %v1246_v4  ;;  %v111_v15 = vrot.slane %v101_v10, %v1246_v4  ;;  %v662_v7 = vld [vmem:[%s1338_s8] ss:$0 sm:$0xff] }
  0x41   :  { %806 = vmatprep.subr.bf16.mxu0 %v1030_v20  ;;  %v121_v18 = vrot.slane %v116_v16, %v1244_v2 }
  0x42   :  { %864 = vmatpush1.bf16.msra.mxu1 %v1074_v37  ;;  %v736_v37 = vld [vmem:[%s1337_s7 + $0x50] sm:$0xff]  }
  0x43   :  { %866 = vmatprep.subr.bf16.mxu1 %v1075_v38  ;;  %v728_v38 = vld [vmem:[%s1337_s7 + $0x10] sm:$0xff]  }
  0x44   :  { %808 = vmatpush1.bf16.msra.mxu0 %v1032_v23 }
  0x45   :  { %810 = vmatprep.subr.bf16.mxu0 %v1033_v24 }
  0x46   :  { %868 = vmatpush1.bf16.msra.mxu1 %v1077_v41  ;;  %v738_v41 = vld [vmem:[%s1337_s7 + $0x60] sm:$0xff]  }
  0x47   :  { %870 = vmatprep.subr.bf16.mxu1 %v1078_v42  ;;  %v730_v42 = vld [vmem:[%s1337_s7 + $0x20] sm:$0xff]  }
  0x48   :  { %812 = vmatpush1.bf16.msra.mxu0 %v1035_v27 }
  0x49   :  { %814 = vmatprep.subr.bf16.mxu0 %v1036_v28 }
  0x4a   :  { %872 = vmatpush1.bf16.msra.mxu1 %v1080_v45  ;;  %v740_v45 = vld [vmem:[%s1337_s7 + $0x70] sm:$0xff]  }
  0x4b   :  { %874 = vmatprep.subr.bf16.mxu1 %v1081_v46  ;;  %v228_v46 = vld [vmem:[%s1334_s4] sm:$0x3] }
  0x4c   :  { %816 = vmatpush1.bf16.msra.mxu0 %v1038_v31  ;;  %v1102_v31 = vld [vmem:[#allocation4 + $0xf4] ss:$8 sps:$4 sm:$0xff]  }
  0x4d   :  { %818 = vmatprep.subr.bf16.mxu0 %v1039_v32  ;;  %v1104_v32 = vld [vmem:[#allocation4 + $0xf0] ss:$8 sps:$4 sm:$0xff]  }
  0x4e   :  { %876 = vmatpush1.bf16.msra.mxu1 %v1083_v49 }
  0x4f   :  { %878 = vmatprep.subr.bf16.mxu1 %v1084_v50 }
  0x50   :  { %820 = vmatpush1.bf16.msra.mxu0 %v1041_v35  ;;  %v735_v35 = vld [vmem:[%s1337_s7 + $0x48] sm:$0xff]  }
  0x51   :  { %822 = vmatprep.subr.bf16.mxu0 %v1042_v36  ;;  %v727_v36 = vld [vmem:[%s1337_s7 + $0x8] sm:$0xff]  }
  0x52   :  { %880 = vmatpush1.bf16.msra.mxu1 %v1086_v53 }
  0x53   :  { %882 = vmatprep.subr.bf16.mxu1 %v1087_v54 }
  0x54   :  { %824 = vmatpush1.bf16.msra.mxu0 %v1044_v39  ;;  %v737_v39 = vld [vmem:[%s1337_s7 + $0x58] sm:$0xff]  }
  0x55   :  { %826 = vmatprep.subr.bf16.mxu0 %v1045_v40  ;;  %v729_v40 = vld [vmem:[%s1337_s7 + $0x18] sm:$0xff]  }
  0x56   :  { %884 = vmatpush1.bf16.msra.mxu1 %v1089_v56  ;;  %v741_v56 = vld [vmem:[%s1337_s7 + $0x78] sm:$0xff]  }
  0x57   :  { %886 = vmatprep.subr.bf16.mxu1 %v1090_v57  ;;  %v733_v57 = vld [vmem:[%s1337_s7 + $0x38] sm:$0xff]  }
  0x58   :  { %828 = vmatpush1.bf16.msra.mxu0 %v1047_v43  ;;  %v739_v43 = vld [vmem:[%s1337_s7 + $0x68] sm:$0xff]  }
  0x59   :  { %830 = vmatprep.subr.bf16.mxu0 %v1048_v44  ;;  %v731_v44 = vld [vmem:[%s1337_s7 + $0x28] sm:$0xff]  }
  0x5a   :  { %888 = vmatpush1.bf16.msra.mxu1 %v1092_v58  ;;  %v409_v58 = vld [vmem:[%s1336_s6] sm:$0x3] }
  0x5b   :  { %890 = vmatprep.subr.bf16.mxu1 %v1093_v59  ;;  %v414_v59 = vrot.slane %v409_v58, %v1244_v2 }
  0x5c   :  { %832 = vmatpush1.bf16.msra.mxu0 %v1050_v47  ;;  %v233_v47 = vrot.slane %v228_v46, %v1244_v2  ;;  %v636_v2 = vand.u32 127, %v70_v0 }
  0x5d   :  { %834 = vmatprep.subr.bf16.mxu0 %v1051_v48  ;;  %v237_v48 = vrot.slane %v228_v46, %v1246_v4 }
  0x5e   :  { %892 = vmatpush1.bf16.msra.mxu1 %v1095_v60  ;;  %v418_v60 = vrot.slane %v409_v58, %v1246_v4  ;;  %vm637_vm1 = vcmp.ge.s32.totalorder %v636_v2, 4 }
  0x5f   :  { %894 = vmatprep.subr.bf16.mxu1 %v1096_v61 }
  0x60   :  { %836 = vmatpush1.bf16.msra.mxu0 %v1053_v51 }
  0x61   :  { %838 = vmatprep.subr.bf16.mxu0 %v1054_v52 }
  0x62   :  { %896 = vmatpush1.bf16.msra.mxu1 %v1098_v62 }
  0x63   :  { %898 = vmatprep.subr.bf16.mxu1 %v1099_v63 }
  0x64   :  { %840 = vmatpush1.bf16.msra.mxu0 %v1056_v55  ;;  %v732_v55 = vld [vmem:[%s1337_s7 + $0x30] sm:$0xff]  }
  0x65   :  { %906 = vmatprep.subr.bf16.mxu0 %v734_v33 }
  0x66   :  { %900 = vmatpush1.bf16.msra.mxu1 %v1101_v30 }
  0x67   :  { %902 = vmatprep.subr.bf16.mxu1 %v1102_v31 }
  0x6a   :  { %904 = vmatpush1.bf16.msra.mxu1 %v1104_v32 }
  0xa6   :  { %v67_v11 = vpop.permute.xlu0 %66 }
  0xa7   :  { %v88_v20 = vmul.f32 %v83_v12, %v67_v11  ;;  %v89_v21 = vmul.f32 %v87_v13, %v67_v11 }
  0xab   :  { %v92_v17 = vpop.permute.xlu0 %91 }
  0xac   :  { %v112_v22 = vmul.f32 %v107_v14, %v92_v17  ;;  %v113_v23 = vmul.f32 %v111_v15, %v92_v17 }
  0xae   :  { %v114_v24 = vadd.f32 %v112_v22, %v88_v20  ;;  %v115_v25 = vadd.f32 %v113_v23, %v89_v21 }
  0xb0   :  { %v129_v26 = vadd.f32 %v125_v19, %v115_v25  ;;  %v128_v27 = vadd.f32 %v121_v18, %v114_v24 }
  0xb2   :  { %v131_v28 = vmax.f32 %v129_v26, 0.0  ;;  %v130_v29 = vmax.f32 %v128_v27, 0.0 }
  0xb4   :  { %304 = vmatprep.mubr.f32.mxu0 %v131_v28 }
  0xb5   :  { %305 = vmatmul.mubr.f32.vlgmr.msra.gmra.mrb[0].mxu0 %v130_v29 }
  0xb6   :  { %908 = vmatpush3.bf16.msra.mxu0 %v664_v34 }
  0xb7   :  { %910 = vmatprep.subr.bf16.mxu0 %v735_v35 }
  0xba   :  { %912 = vmatpush3.bf16.msra.mxu0 %v727_v36 }
  0xbb   :  { %914 = vmatprep.subr.bf16.mxu0 %v736_v37 }
  0xbe   :  { %916 = vmatpush3.bf16.msra.mxu0 %v728_v38 }
  0xbf   :  { %918 = vmatprep.subr.bf16.mxu0 %v737_v39 }
  0xc2   :  { %920 = vmatpush3.bf16.msra.mxu0 %v729_v40 }
  0xc3   :  { %922 = vmatprep.subr.bf16.mxu0 %v738_v41 }
  0xc6   :  { %924 = vmatpush3.bf16.msra.mxu0 %v730_v42 }
  0xc7   :  { %926 = vmatprep.subr.bf16.mxu0 %v739_v43 }
  0xca   :  { %928 = vmatpush3.bf16.msra.mxu0 %v731_v44 }
  0xcb   :  { %930 = vmatprep.subr.bf16.mxu0 %v740_v45 }
  0xce   :  { %932 = vmatpush3.bf16.msra.mxu0 %v732_v55 }
  0xcf   :  { %934 = vmatprep.subr.bf16.mxu0 %v741_v56 }
  0xd2   :  { %936 = vmatpush3.bf16.msra.mxu0 %v733_v57 }
 0x188   :  { %v306_v49 = vpop.f32.mrb[0].mxu0 }
 0x189   :  { %v307_v50 = vadd.f32 %v306_v49, %v233_v47  ;;  %v308_v51 = vpop.f32.mrb[1].mxu0 }
 0x18a   :  { %v309_v52 = vadd.f32 %v308_v51, %v237_v48 }
 0x18b   :  { %v311_v54 = vmax.f32 %v307_v50, 0.0 }
 0x18c   :  { %v312_v53 = vmax.f32 %v309_v52, 0.0 }
 0x18e   :  { %485 = vmatprep.mubr.f32.mxu1 %v312_v53 }
 0x18f   :  { %486 = vmatmul.mubr.f32.vlgmr.msra.gmra.mrb[0].mxu1 %v311_v54 }
 0x262   :  { %v487_v61 = vpop.f32.mrb[0].mxu1 }
 0x263   :  { %v488_v62 = vadd.f32 %v487_v61, %v414_v59  ;;  %v489_v63 = vpop.f32.mrb[1].mxu1 }
 0x264   :  { %v490_v1 = vadd.f32 %v489_v63, %v418_v60 }
 0x265   :  { %v492_v5 = vmax.f32 %v488_v62, 0.0 }
 0x266   :  { %v493_v3 = vmax.f32 %v490_v1, 0.0 }
 0x268   :  { %629 = vmatprep.mubr.f32.mxu0 %v493_v3 }
 0x269   :  { %630 = vmatmul.mubr.f32.vlgmr.msra.gmra.mrb[2].mxu0 %v492_v5 }
 0x33c   :  { %v774_v6 = vpop.f32.mrb[2].mxu0 }
 0x33d   :  { %v775_v8 = vpop.f32.mrb[3].mxu0 }
 0x33e   :  { %v776_v9 = vadd.f32 %v775_v8, %v774_v6 }
 0x340   :  { %v632_v10 = vadd.f32 %v776_v9, %v662_v7 }
 0x342   :  { %v638_v11 = vmul.f32 1.442695, %v632_v10  ;;  %v645_v15 = vsel %vm637_vm1, %v632_v10, 0.0 }
 0x344   :  { %1105 = vpow2.f32 %v638_v11 }
 0x34e   :  { %v1106_v4 = vpop.eup %1105 }
 0x34f   :  { %v640_v12 = vsel %vm637_vm1, %v1106_v4, %v632_v10 }
 0x350   :  { %v643_v13 = vmul.f32 %v640_v12, %v640_v12  ;;  %642 = vst.msk [vmem:[%s1339_s9] sm:$0xff] %vm641_vm0, %v640_v12 }
 0x352   :  { %v644_v14 = vmul.f32 0.5, %v643_v13 }
 0x354   :  { %v646_v16 = vsub.f32 %v644_v14, %v645_v15 }
 0x356   :  { %v647_v17 = vsel %vm641_vm0, %v646_v16, 0.0 }
 0x357   :  { %648 = vadd.xlane.f32.xlu1 %v647_v17 }
 0x3e4   :  { %v649_v18 = vpop.xlane.xlu1 %648 }
 0x3e5   :  { %651 = vst.msk [vmem:[%s1340_s10] sm:$0xff] %vm650_vm2, %v649_v18 }
 0x3e6   :  { %660 = vsyncpa [#allocation3], 1 }
 0x3e7   :  { %661 = vsyncpa [#allocation5], 1 }

</bundles_post_ra>
